<compile_context>
chip_gen: v7x
topology: tpu7x:2x2x1
jax: 0.10.0
libtpu: 0.0.40
codegen_flags: <defaults>
</compile_context>

<pallas_src>
import math

import jax
import jax.numpy as jnp
from jax.experimental import pallas as pl
from jax.experimental.pallas import tpu as pltpu


def _decoder_kernel(x_ref, w1t_ref, b1_ref, w2t_ref, b2_ref, out_ref):
    # x_ref: (1, P, TM, C) block of the original (N, P, M, C) feature tensor.
    # Plane mean is a sum; the 1/P factor is folded into w1t. Accumulate in f32
    # (input may be bf16).
    x = jnp.sum(x_ref[...].astype(jnp.float32), axis=(0, 1))            # (TM, C)

    # FC1 in transposed form: (H, C) x (TM, C)^T -> (H, TM).  trans-B
    # dot_general (same dimension numbers as flash-attention's q @ k^T),
    # f32 accumulation.  Result is lane-dense in TM.
    h = jax.lax.dot_general(
        w1t_ref[...], x,
        dimension_numbers=(((1,), (1,)), ((), ())),
        preferred_element_type=jnp.float32,
    ) + b1_ref[...]                                                      # (H, TM)

    # Softplus (EUP) on the lane-dense tile.  w2t's dtype selects the
    # activation precision: bf16 on v6e/v7x halves EUP/VALU work, f32 on v5e.
    h = jax.nn.softplus(h.astype(w2t_ref.dtype))                         # (H, TM)

    # FC2: (OD, H) x (H, TM) -> (OD, TM), f32 accumulation.
    y = jnp.dot(w2t_ref[...], h, preferred_element_type=jnp.float32) + b2_ref[...]

    # Row 0 = sigma (raw); rows 1: = rgb = sigmoid * (1 + 2e-3) - 1e-3.
    # No column mask, no sigmoid on the sigma row; lane-dense stores.
    out_ref[0, 0:1, :] = y[0:1, :]
    out_ref[0, 1:, :] = jax.nn.sigmoid(y[1:, :]) * (1.0 + 2.0 * 0.001) - 0.001


def _round_up(x, m):
    return -(-x // m) * m


def _default_activation_dtype():
    """bf16 activations on chips with bf16 VPU/EUP (v6e and later); f32 elsewhere."""
    try:
        kind = jax.devices()[0].device_kind.lower()
    except Exception:
        return jnp.float32
    for old in ("v2", "v3", "v4", "v5"):
        if old in kind:
            return jnp.float32
    return jnp.bfloat16


def osg_decoder_forward(sampled_features, ray_directions, params, *,
                        tile_m=16384, activation_dtype=None):
    """sampled_features: (N, P, M, C) [f32 or bf16]; ray_directions: (N, M, 3) (unused)."""
    del ray_directions  # unused in the reference forward
    w1, b1, w2, b2 = params  # effective (gain/lr_mul-scaled) params, w stored (in, out)

    N, P, M, C = sampled_features.shape
    H = w1.shape[1]
    out_dim = w2.shape[1]          # 1 + decoder_output_dim

    if activation_dtype is None:
        activation_dtype = _default_activation_dtype()

    # Fold the plane-mean 1/P into FC1 and pre-transpose both weight matrices
    # for the in-kernel (channels, rays) layout.  Tiny one-time ops.
    w1_t = (w1 * (1.0 / P)).T.astype(jnp.float32)            # (H, C)
    b1_col = b1.reshape(H, 1).astype(jnp.float32)            # (H, 1)
    w2_t = w2.T.astype(activation_dtype)                     # (OD, H) — dtype drives act path
    b2_col = b2.reshape(out_dim, 1).astype(jnp.float32)      # (OD, 1)

    # Tile along M: even split, multiple of 128 (lane-dense output blocks),
    # and keep >= 2 grid steps when possible so both v7x TensorCores get work.
    n_tiles = pl.cdiv(M, tile_m)
    if N * n_tiles < 2:
        n_tiles = max(1, min(2, pl.cdiv(M, 128)))
    tm = _round_up(pl.cdiv(M, n_tiles), 128)
    n_tiles = pl.cdiv(M, tm)
    M_pad = n_tiles * tm

    feats = sampled_features
    if M_pad != M:
        feats = jnp.pad(feats, ((0, 0), (0, 0), (0, M_pad - M), (0, 0)))

    in_bytes = int(feats.dtype.itemsize)
    weight_bytes = int(w1_t.size * 4 + b1_col.size * 4 + b2_col.size * 4
                       + w2_t.size * w2_t.dtype.itemsize)
    block_in_bytes = P * tm * C * in_bytes
    block_out_bytes = out_dim * tm * 4
    est_vmem = 2 * (block_in_bytes + block_out_bytes) + 2 * weight_bytes + (1 << 20)
    # Only raise the scoped-VMEM limit when large tiles actually need it
    # (the v5e default is 16 MiB; default tiles fit everywhere).
    vmem_limit = None
    if est_vmem > (16 << 20):
        vmem_limit = int(min(est_vmem + (4 << 20), 100 << 20))

    cost = pl.CostEstimate(
        flops=int(2 * N * M_pad * (P * C + C * H + H * out_dim)),
        transcendentals=int(N * M_pad * (2 * H + (out_dim - 1))),
        bytes_accessed=int(feats.size * in_bytes + N * M_pad * out_dim * 4 + weight_bytes),
    )

    out = pl.pallas_call(
        _decoder_kernel,
        out_shape=jax.ShapeDtypeStruct((N, out_dim, M_pad), jnp.float32),
        grid_spec=pltpu.PrefetchScalarGridSpec(
            num_scalar_prefetch=0,
            grid=(N, n_tiles),
            in_specs=[
                # Direct (N, P, M, C) tiling: one ray-batch, all planes, tm rays.
                pl.BlockSpec((1, P, tm, C), lambda n, i: (n, 0, i, 0)),
                pl.BlockSpec((H, C), lambda n, i: (0, 0)),
                pl.BlockSpec((H, 1), lambda n, i: (0, 0)),
                pl.BlockSpec((out_dim, H), lambda n, i: (0, 0)),
                pl.BlockSpec((out_dim, 1), lambda n, i: (0, 0)),
            ],
            # Lane-dense output: block (1, out_dim, tm) -> unmasked vst.
            out_specs=pl.BlockSpec((1, out_dim, tm), lambda n, i: (n, 0, i)),
        ),
        compiler_params=pltpu.CompilerParams(
            dimension_semantics=("parallel", "parallel"),
            vmem_limit_bytes=vmem_limit,
        ),
        cost_estimate=cost,
    )(feats, w1_t, b1_col, w2_t, b2_col)

    # (N, OD, M_pad) -> (N, M, OD): slice off pad, swap axes (free layout op).
    out = jnp.swapaxes(out[:, :, :M], 1, 2)
    return {"rgb": out[..., 1:], "sigma": out[..., 0:1]}


def init_osg_decoder_params(key, n_features, decoder_output_dim, decoder_lr_mul):
    """Deterministic init matching EG3D FullyConnectedLayer semantics."""
    hidden_dim = 64
    k1, k2 = jax.random.split(key)

    # raw params: W ~ randn(out, in) / lr_mul, b = 0
    w1_raw = jax.random.normal(k1, (hidden_dim, n_features), jnp.float32) / decoder_lr_mul
    b1_raw = jnp.zeros((hidden_dim,), jnp.float32)
    w2_raw = jax.random.normal(k2, (1 + decoder_output_dim, hidden_dim), jnp.float32) / decoder_lr_mul
    b2_raw = jnp.zeros((1 + decoder_output_dim,), jnp.float32)

    # effective params used in forward: W * (lr_mul / sqrt(in)), b * lr_mul
    g1 = decoder_lr_mul / math.sqrt(n_features)
    g2 = decoder_lr_mul / math.sqrt(hidden_dim)
    w1 = (w1_raw * g1).T            # (C, H)
    b1 = b1_raw * decoder_lr_mul
    w2 = (w2_raw * g2).T            # (H, 1+OD)
    b2 = b2_raw * decoder_lr_mul
    return (w1, b1, w2, b2)


def _reference_forward(sampled_features, params):
    """Pure-JAX reference mirroring the PyTorch module, for sanity check."""
    # TODO(synk): jax.nn.softplus lacks PyTorch's threshold=20 linearization;
    #             differences are far below the test tolerances.
    w1, b1, w2, b2 = params
    x = sampled_features.mean(axis=1)                 # (N, M, C)
    N, M, C = x.shape
    x = x.reshape(N * M, C)
    x = x @ w1 + b1
    x = jax.nn.softplus(x)
    x = x @ w2 + b2
    x = x.reshape(N, M, -1)
    rgb = jax.nn.sigmoid(x[..., 1:]) * (1 + 2 * 0.001) - 0.001
    sigma = x[..., 0:1]
    return {"rgb": rgb, "sigma": sigma}


if __name__ == "__main__":
    key = jax.random.PRNGKey(0)
    k_feat, k_ray, k_par = jax.random.split(key, 3)

    # Small shapes: N=2 ray-batches, P=3 planes, M=256 samples, C=16 features,
    # hidden=64, decoder_output_dim=3 -> net output channels = 4.
    N, P, M, C = 2, 3, 256, 16
    decoder_output_dim = 3
    decoder_lr_mul = 1.0

    sampled_features = jax.random.normal(k_feat, (N, P, M, C), jnp.float32)
    ray_directions = jax.random.normal(k_ray, (N, M, 3), jnp.float32)
    params = init_osg_decoder_params(k_par, C, decoder_output_dim, decoder_lr_mul)

    ref = _reference_forward(sampled_features, params)

    # 1) Full-f32 path: tight tolerance against the pure-JAX reference.
    out = osg_decoder_forward(sampled_features, ray_directions, params,
                              activation_dtype=jnp.float32)
    jax.block_until_ready(out)
    assert out["rgb"].shape == (N, M, decoder_output_dim)
    assert out["sigma"].shape == (N, M, 1)
    assert jnp.allclose(out["rgb"], ref["rgb"], atol=1e-4, rtol=1e-4)
    assert jnp.allclose(out["sigma"], ref["sigma"], atol=1e-4, rtol=1e-4)

    # 2) bf16 feature read + bf16 activation path (v5e bandwidth / v6e-v7x EUP
    #    optimizations); f32 accumulation keeps it within a loose tolerance.
    out_bf16 = osg_decoder_forward(sampled_features.astype(jnp.bfloat16),
                                   ray_directions, params,
                                   activation_dtype=jnp.bfloat16)
    jax.block_until_ready(out_bf16)
    assert jnp.allclose(out_bf16["rgb"], ref["rgb"], atol=5e-2, rtol=5e-2)
    assert jnp.allclose(out_bf16["sigma"], ref["sigma"], atol=5e-2, rtol=5e-2)

    # 3) Auto-selected activation dtype for the local device generation.
    out_auto = osg_decoder_forward(sampled_features, ray_directions, params)
    jax.block_until_ready(out_auto)
    assert jnp.allclose(out_auto["rgb"], ref["rgb"], atol=5e-2, rtol=5e-2)
    assert jnp.allclose(out_auto["sigma"], ref["sigma"], atol=5e-2, rtol=5e-2)

    print("KERNEL_OK")
</pallas_src>

<mosaic_0001>
module attributes {stable_mosaic.version = 11 : i64} {
  func.func @_decoder_kernel(%arg0: i32, %arg1: i32, %arg2: memref<1x3x256x16xf32, #tpu.memory_space<vmem>>, %arg3: memref<64x16xf32, #tpu.memory_space<vmem>>, %arg4: memref<64x1xf32, #tpu.memory_space<vmem>>, %arg5: memref<4x64xf32, #tpu.memory_space<vmem>>, %arg6: memref<4x1xf32, #tpu.memory_space<vmem>>, %arg7: memref<1x4x256xf32, #tpu.memory_space<vmem>>) attributes {dimension_semantics = [#tpu.dimension_semantics<parallel>, #tpu.dimension_semantics<parallel>], iteration_bounds = array<i64: 2, 1>, scalar_prefetch = 0 : i64, scratch_operands = 0 : i64, tpu.core_type = #tpu.core_type<tc>, window_params = [{transform_indices = @transform_0, window_bounds = array<i64: 1, 3, 256, 16>}, {pipeline_mode = #tpu.pipeline_mode<synchronous>, transform_indices = @transform_1, window_bounds = array<i64: 64, 16>}, {pipeline_mode = #tpu.pipeline_mode<synchronous>, transform_indices = @transform_2, window_bounds = array<i64: 64, 1>}, {pipeline_mode = #tpu.pipeline_mode<synchronous>, transform_indices = @transform_3, window_bounds = array<i64: 4, 64>}, {pipeline_mode = #tpu.pipeline_mode<synchronous>, transform_indices = @transform_4, window_bounds = array<i64: 4, 1>}, {transform_indices = @transform_5, window_bounds = array<i64: 1, 4, 256>}]} {
    %c0 = arith.constant 0 : index
    %c0_0 = arith.constant 0 : index
    %c0_1 = arith.constant 0 : index
    %c0_2 = arith.constant 0 : index
    %0 = vector.load %arg2[%c0, %c0_0, %c0_1, %c0_2] : memref<1x3x256x16xf32, #tpu.memory_space<vmem>>, vector<1x3x256x16xf32>
    %cst = arith.constant dense<0.000000e+00> : vector<256x16xf32>
    %1 = vector.multi_reduction <add>, %0, %cst [0, 1] : vector<1x3x256x16xf32> to vector<256x16xf32>
    %c0_3 = arith.constant 0 : index
    %c0_4 = arith.constant 0 : index
    %2 = vector.load %arg3[%c0_3, %c0_4] : memref<64x16xf32, #tpu.memory_space<vmem>>, vector<64x16xf32>
    %cst_5 = arith.constant dense<0.000000e+00> : vector<64x256xf32>
    %3 = tpu.matmul %2, %1, %cst_5 {dimension_numbers = #tpu.dot_dimension_numbers<[1], [1], [0], [0], [0, 0, 1, 0], [], []>} : vector<64x16xf32>, vector<256x16xf32>, vector<64x256xf32> -> vector<64x256xf32>
    %c0_6 = arith.constant 0 : index
    %c0_7 = arith.constant 0 : index
    %4 = vector.load %arg4[%c0_6, %c0_7] : memref<64x1xf32, #tpu.memory_space<vmem>>, vector<64x1xf32>
    %5 = vector.broadcast %4 : vector<64x1xf32> to vector<64x256xf32>
    %6 = arith.addf %3, %5 : vector<64x256xf32>
    %cst_8 = arith.constant 0.000000e+00 : f32
    %7 = vector.broadcast %cst_8 : f32 to vector<64x256xf32>
    %8 = arith.maximumf %6, %7 : vector<64x256xf32>
    %9 = vector.broadcast %cst_8 : f32 to vector<64x256xf32>
    %10 = arith.subf %6, %9 : vector<64x256xf32>
    %11 = arith.cmpf one, %10, %10 : vector<64x256xf32>
    %12 = vector.broadcast %cst_8 : f32 to vector<64x256xf32>
    %13 = arith.addf %6, %12 : vector<64x256xf32>
    %14 = math.absf %10 : vector<64x256xf32>
    %cst_9 = arith.constant 0.000000e+00 : f32
    %15 = vector.broadcast %cst_9 : f32 to vector<64x256xf32>
    %16 = arith.subf %15, %14 : vector<64x256xf32>
    %17 = math.exp %16 : vector<64x256xf32>
    %18 = math.log1p %17 : vector<64x256xf32>
    %19 = arith.addf %8, %18 : vector<64x256xf32>
    %20 = arith.select %11, %13, %19 : vector<64x256xi1>, vector<64x256xf32>
    %c0_10 = arith.constant 0 : index
    %c0_11 = arith.constant 0 : index
    %21 = vector.load %arg5[%c0_10, %c0_11] : memref<4x64xf32, #tpu.memory_space<vmem>>, vector<4x64xf32>
    %cst_12 = arith.constant dense<0.000000e+00> : vector<4x256xf32>
    %22 = tpu.matmul %21, %20, %cst_12 {dimension_numbers = #tpu.dot_dimension_numbers<[1], [0], [0], [1], [0, 0, 1, 1], [], []>} : vector<4x64xf32>, vector<64x256xf32>, vector<4x256xf32> -> vector<4x256xf32>
    %c0_13 = arith.constant 0 : index
    %c0_14 = arith.constant 0 : index
    %23 = vector.load %arg6[%c0_13, %c0_14] : memref<4x1xf32, #tpu.memory_space<vmem>>, vector<4x1xf32>
    %24 = vector.broadcast %23 : vector<4x1xf32> to vector<4x256xf32>
    %25 = arith.addf %22, %24 : vector<4x256xf32>
    %26 = vector.extract_strided_slice %25 {offsets = [0, 0], sizes = [1, 256], strides = [1, 1]} : vector<4x256xf32> to vector<1x256xf32>
    %c0_15 = arith.constant 0 : index
    %c0_16 = arith.constant 0 : index
    %c0_17 = arith.constant 0 : index
    %27 = vector.load %arg7[%c0_15, %c0_16, %c0_17] : memref<1x4x256xf32, #tpu.memory_space<vmem>>, vector<1x1x256xf32>
    %28 = vector.shape_cast %27 : vector<1x1x256xf32> to vector<1x256xf32>
    %29 = vector.shape_cast %26 : vector<1x256xf32> to vector<1x1x256xf32>
    tpu.vector_store %arg7[%c0_15, %c0_16, %c0_17], %29 {strides = array<i32>} : memref<1x4x256xf32, #tpu.memory_space<vmem>>, vector<1x1x256xf32>,
    %30 = vector.extract_strided_slice %25 {offsets = [1, 0], sizes = [3, 256], strides = [1, 1]} : vector<4x256xf32> to vector<3x256xf32>
    %31 = arith.negf %30 : vector<3x256xf32>
    %32 = math.exp %31 : vector<3x256xf32>
    %cst_18 = arith.constant 1.000000e+00 : f32
    %33 = vector.broadcast %cst_18 : f32 to vector<3x256xf32>
    %34 = arith.addf %33, %32 : vector<3x256xf32>
    %35 = arith.divf %33, %34 : vector<3x256xf32>
    %cst_19 = arith.constant 1.002000e+00 : f32
    %36 = vector.broadcast %cst_19 : f32 to vector<3x256xf32>
    %37 = arith.mulf %35, %36 : vector<3x256xf32>
    %cst_20 = arith.constant 1.000000e-03 : f32
    %38 = vector.broadcast %cst_20 : f32 to vector<3x256xf32>
    %39 = arith.subf %37, %38 : vector<3x256xf32>
    %c0_21 = arith.constant 0 : index
    %c1 = arith.constant 1 : index
    %c0_22 = arith.constant 0 : index
    %40 = vector.load %arg7[%c0_21, %c1, %c0_22] : memref<1x4x256xf32, #tpu.memory_space<vmem>>, vector<1x3x256xf32>
    %41 = vector.shape_cast %40 : vector<1x3x256xf32> to vector<3x256xf32>
    %42 = vector.shape_cast %39 : vector<3x256xf32> to vector<1x3x256xf32>
    tpu.vector_store %arg7[%c0_21, %c1, %c0_22], %42 {strides = array<i32>} : memref<1x4x256xf32, #tpu.memory_space<vmem>>, vector<1x3x256xf32>,
    return
  }
  func.func @transform_0(%arg0: i32, %arg1: i32) -> (i32, i32, i32, i32) {
    %c0_i32 = arith.constant 0 : i32
    %c0_i32_0 = arith.constant 0 : i32
    %c0_i32_1 = arith.constant 0 : i32
    return %arg0, %c0_i32, %arg1, %c0_i32_0 : i32, i32, i32, i32
  }
  func.func @transform_1(%arg0: i32, %arg1: i32) -> (i32, i32) {
    %c0_i32 = arith.constant 0 : i32
    %c0_i32_0 = arith.constant 0 : i32
    %c0_i32_1 = arith.constant 0 : i32
    return %c0_i32, %c0_i32_0 : i32, i32
  }
  func.func @transform_2(%arg0: i32, %arg1: i32) -> (i32, i32) {
    %c0_i32 = arith.constant 0 : i32
    %c0_i32_0 = arith.constant 0 : i32
    %c0_i32_1 = arith.constant 0 : i32
    return %c0_i32, %c0_i32_0 : i32, i32
  }
  func.func @transform_3(%arg0: i32, %arg1: i32) -> (i32, i32) {
    %c0_i32 = arith.constant 0 : i32
    %c0_i32_0 = arith.constant 0 : i32
    %c0_i32_1 = arith.constant 0 : i32
    return %c0_i32, %c0_i32_0 : i32, i32
  }
  func.func @transform_4(%arg0: i32, %arg1: i32) -> (i32, i32) {
    %c0_i32 = arith.constant 0 : i32
    %c0_i32_0 = arith.constant 0 : i32
    %c0_i32_1 = arith.constant 0 : i32
    return %c0_i32, %c0_i32_0 : i32, i32
  }
  func.func @transform_5(%arg0: i32, %arg1: i32) -> (i32, i32, i32) {
    %c0_i32 = arith.constant 0 : i32
    %c0_i32_0 = arith.constant 0 : i32
    return %arg0, %c0_i32, %arg1 : i32, i32, i32
  }
}

</mosaic_0001>

<bundles_post_ra>
// kernel: tpu_custom_call.1
= control target key start
LH: loop header
LB: loop body
LE: loop exit
PB: predicated region body
PF: predicated region fallthrough
CT: control target
= control target key end

     0   :  { %10 = vsyncpa [#allocation3], 0  ;;  %s2458_s0 = inlined_call_operand.vmem [shape: f32[2,3,256,16], index: 0, kind: input, shape index: {}]   ;;  %s2459_s1 = inlined_call_operand.vmem [shape: f32[64,16], index: 1, kind: input, shape index: {}]   ;;  %s2460_s2 = inlined_call_operand.vmem [shape: f32[64,1], index: 2, kind: input, shape index: {}]   ;;  %s2461_s3 = inlined_call_operand.vmem [shape: f32[4,64], index: 3, kind: input, shape index: {}]   ;;  %s2462_s4 = inlined_call_operand.vmem [shape: f32[4,1], index: 4, kind: input, shape index: {}]   ;;  %s2463_s5 = inlined_call_operand.hbm [shape: f32[2,4,256], index: 5, kind: output, shape index: {}]  }
   0x1   :  { %12 = vsyncpa [#allocation3 + $0x1], 0  ;;  %s1724_s18 = smov 0   ;;  %s1726_s19 = smov 0  }
   0x2   :  { %s1728_s20 = smov 0   ;;  %s1730_s21 = smov 0  }
   0x3   :  { %s1732_s22 = smov 0   ;;  %s1734_s23 = smov 0  }
   0x4 LB: > { %s1307_s24 = sadd.s32 4294967295, %s1688_s23   ;;  %s1308_s25 = sadd.s32 4294967294, %s1688_s23   ;;  %s1688_s23 = sphi %s1734_s23, %s18_s23   ;;  %s1684_s22 = sphi %s1732_s22, %s2494_s22   ;;  %s1680_s21 = sphi %s1730_s21, %s2493_s21   ;;  %s1676_s20 = sphi %s1728_s20, %s2492_s20   ;;  %s1672_s19 = sphi %s1726_s19, %s2491_s19   ;;  %s1668_s18 = sphi %s1724_s18, %s2490_s18  }
   0x5   : > { %s30_s26 = sadd.s32 1, %s1684_s22  ;;  %s151_s27 = sadd.s32 1, %s1676_s20 }
   0x6   : > { %p32_p0 = scmp.ge.s32.totalorder %s30_s26, 2  ;;  %p161_p1 = scmp.ne.s32.totalorder %s1676_s20, %s1672_s19 }
   0x7   : > { %p162_p2 = scmp.eq.s32.totalorder %s1307_s24, 1  ;;  %p167_p3 = scmp.ne.s32.totalorder %s1672_s19, %s1668_s18 }
   0x8   : > { %s2496_s26 = smov (%p32_p0, %s30_s26), 0  ;;  %p168_p5 = scmp.eq.s32.totalorder %s1308_s25, 1 }
   0x9   : > { %p1764_p4 = por %p162_p2, %p161_p1  ;;  %s146_s29 = ssub.s32 %s1684_s22, %s2496_s26 }
   0xa   : > { %p1311_p6 = scmp.ge.s32.totalorder %s1688_s23, 1  ;;  %p149_p7 = scmp.eq.s32.totalorder %s146_s29, 0 }
   0xb   : > { %p1771_p8 = por %p168_p5, %p167_p3  ;;  %p211_p9 = scmp.lt.s32.totalorder %s1688_s23, 3 }
   0xc   : > { %s1777_s6 = scalar_select %p149_p7, %s1676_s20, %s151_s27  }
   0xd   : > { %p212_p10 = pnand %p1311_p6, %p211_p9 }
   0xe   : > { %p244_p11 = scmp.lt.s32.totalorder (!%p212_p10), %s1680_s21, 1  ;;  %vm350_vm0 = vcmask (!%p212_p10), 130048   ;;  %v1783_v0 = vld [vmem:[%s2459_s1] sm:$0xff] (!%p212_p10)  ;;  %v1690_v1 = vmov (!%p212_p10), 0   ;;  %v521_v3 = vld [vmem:[%s2460_s2 + $0x10] sm:$0xff] (!%p212_p10)  ;;  %v520_v4 = vld [vmem:[%s2460_s2 + $0x8] sm:$0xff] (!%p212_p10) }
   0xf   : > { %215 = sbr.rel (%p212_p10) target bundleno = 666 (0x29a), region = 40  ;;  %1397 = vmatprep.mubr.msk.f32.mxu0 (!%p212_p10), %vm350_vm0, %v1783_v0  ;;  %1536 = vset.pattern.permute.xlu0 (!%p212_p10), %v1690_v1  ;;  %v519_v2 = vld [vmem:[%s2460_s2] sm:$0xff] (!%p212_p10)  ;;  %v522_v5 = vld [vmem:[%s2460_s2 + $0x18] sm:$0xff] (!%p212_p10)  ;;  %vm1807_vm1 = vmpackc.low (!%p212_p10), %vm350_vm0, %vm350_vm0  ;;  %s240_s24 = sand.u32 (!%p212_p10), 1, %s1672_s19  }
  0x10   : > { %1537 = vset.pattern.permute.xlu1 (!%p212_p10), %v1690_v1  ;;  %529 = vperm.xlu0 (!%p212_p10), %1536, %v519_v2   ;;  %v523_v10 = vld [vmem:[%s2460_s2 + $0x20] sm:$0xff] (!%p212_p10)  ;;  %v524_v11 = vld [vmem:[%s2460_s2 + $0x28] sm:$0xff] (!%p212_p10)  ;;  %v525_v39 = vld [vmem:[%s2460_s2 + $0x30] sm:$0xff] (!%p212_p10)  ;;  %s1312_s25 = sshll.u32 (!%p212_p10), %s240_s24, 3  ;;  %s1215_s11 = scalar_lea.sflag (!%p212_p10), [#allocation3], %s240_s24 }
  0x11   : > { %539 = vperm.xlu1 (!%p212_p10), %1537, %v521_v3   ;;  %v526_v47 = vld [vmem:[%s2460_s2 + $0x38] sm:$0xff] (!%p212_p10)  ;;  %s242_s27 = scalar_lea.vmem (!%p212_p10), [#allocation2], %s1312_s25 }
  0x12   : > { %v514_v6 = vld [vmem:[%s2459_s1 + $0x18] sm:$0xff] (!%p212_p10)  ;;  %s1231_s7 = sshll.u32 (!%p212_p10), %s242_s27, 4  ;;  %s2411_s7 = int_to_ptr.vmem [resolvable:$true] %s1231_s7 }
  0x13   : > { %s1610_s12 = scalar_lea.vmem (!%p212_p10), %s2411_s7, 128 }
  0x14   : > { %534 = vperm.xlu0 (!%p212_p10), %1536, %v520_v4   ;;  %p1611_p12 = scmp.ne.s32.totalorder (!%p212_p10), %s2411_s7, %s1610_s12 }
  0x15   : > { %544 = vperm.xlu1 (!%p212_p10), %1537, %v522_v5  }
  0x16   : > { %s245_s9 = scalar_select %p244_p11, %s1680_s21, 1 }
  0x17   : > { %p1612_p13 = pnand %p1611_p12, %p1764_p4 }
  0x18   : > { %s1477_s14 = smul.u32 768, %s245_s9  ;;  %549 = vperm.xlu0 %1536, %v523_v10  }
  0x19   : > { %554 = vperm.xlu1 %1537, %v524_v11   ;;  %p1613_p0 = pneg %p1612_p13 }
  0x1a   : > { %s1803_s29 = scalar_lea.vmem %s2458_s0, %s1477_s14 }
  0x1b   : > { %v270_v7 = vld [vmem:[%s1803_s29 + $0x80] sm:$0xff]  ;;  %v271_v8 = vld [vmem:[%s1803_s29 + $0x88] sm:$0xff]  ;;  %v272_v36 = vld [vmem:[%s1803_s29 + $0x90] sm:$0xff] }
  0x1c   : > { %v302_v9 = vld [vmem:[%s1803_s29 + $0x180] sm:$0xff]  ;;  %v303_v12 = vld [vmem:[%s1803_s29 + $0x188] sm:$0xff]  ;;  %v431_v15 = vsel %vm350_vm0, %v270_v7, 0.0  ;;  %v436_v17 = vsel %vm350_vm0, %v271_v8, 0.0  ;;  %v273_v37 = vld [vmem:[%s1803_s29 + $0x98] sm:$0xff]  ;;  %v441_v46 = vsel %vm350_vm0, %v272_v36, 0.0  ;;  %559 = vperm.xlu0 %1536, %v525_v39  }
  0x1d   : > { %v334_v13 = vld [vmem:[%s1803_s29 + $0x280] sm:$0xff]  ;;  %v335_v14 = vld [vmem:[%s1803_s29 + $0x288] sm:$0xff]  ;;  %v432_v16 = vsel %vm350_vm0, %v302_v9, 0.0  ;;  %v437_v20 = vsel %vm350_vm0, %v303_v12, 0.0  ;;  %v304_v38 = vld [vmem:[%s1803_s29 + $0x190] sm:$0xff]  ;;  %v446_v51 = vsel %vm350_vm0, %v273_v37, 0.0  ;;  %564 = vperm.xlu1 %1537, %v526_v47  }
  0x1e   : > { %v433_v18 = vadd.f32 %v432_v16, %v431_v15  ;;  %v434_v19 = vsel %vm350_vm0, %v334_v13, 0.0  ;;  %v439_v21 = vsel %vm350_vm0, %v335_v14, 0.0  ;;  %v254_v22 = vld [vmem:[%s1803_s29] sm:$0xff]  ;;  %v255_v23 = vld [vmem:[%s1803_s29 + $0x8] sm:$0xff]  ;;  %v438_v25 = vadd.f32 %v437_v20, %v436_v17  ;;  %v305_v43 = vld [vmem:[%s1803_s29 + $0x198] sm:$0xff] }
  0x1f   : > { %v286_v24 = vld [vmem:[%s1803_s29 + $0x100] sm:$0xff]  ;;  %v287_v26 = vld [vmem:[%s1803_s29 + $0x108] sm:$0xff]  ;;  %v351_v29 = vsel %vm350_vm0, %v254_v22, 0.0  ;;  %v356_v31 = vsel %vm350_vm0, %v255_v23, 0.0  ;;  %v336_v44 = vld [vmem:[%s1803_s29 + $0x290] sm:$0xff]  ;;  %v442_v49 = vsel %vm350_vm0, %v304_v38, 0.0 }
  0x20   : > { %v318_v27 = vld [vmem:[%s1803_s29 + $0x200] sm:$0xff]  ;;  %v319_v28 = vld [vmem:[%s1803_s29 + $0x208] sm:$0xff]  ;;  %v352_v30 = vsel %vm350_vm0, %v286_v24, 0.0  ;;  %v435_v32 = vadd.f32 %v434_v19, %v433_v18  ;;  %v357_v35 = vsel %vm350_vm0, %v287_v26, 0.0  ;;  %v440_v40 = vadd.f32 %v439_v21, %v438_v25  ;;  %v337_v45 = vld [vmem:[%s1803_s29 + $0x298] sm:$0xff] }
  0x21   : > { %v353_v33 = vadd.f32 %v352_v30, %v351_v29  ;;  %v354_v34 = vsel %vm350_vm0, %v318_v27, 0.0  ;;  %v358_v41 = vadd.f32 %v357_v35, %v356_v31  ;;  %v359_v42 = vsel %vm350_vm0, %v319_v28, 0.0  ;;  %v256_v52 = vld [vmem:[%s1803_s29 + $0x10] sm:$0xff]  ;;  %v257_v53 = vld [vmem:[%s1803_s29 + $0x18] sm:$0xff]  ;;  %v274_v3 = vld [vmem:[%s1803_s29 + $0xa0] sm:$0xff] }
  0x22   : > { %v444_v50 = vsel %vm350_vm0, %v336_v44, 0.0  ;;  %v288_v54 = vld [vmem:[%s1803_s29 + $0x110] sm:$0xff]  ;;  %v1413_v55 = vpack.c.bf16 %v440_v40, %v435_v32  ;;  %v443_v57 = vadd.f32 %v442_v49, %v441_v46  ;;  %v447_v58 = vsel %vm350_vm0, %v305_v43, 0.0  ;;  %v289_v59 = vld [vmem:[%s1803_s29 + $0x118] sm:$0xff]  ;;  %v306_v4 = vld [vmem:[%s1803_s29 + $0x1a0] sm:$0xff] }
  0x23   : > { %v355_v48 = vadd.f32 %v354_v34, %v353_v33  ;;  %v360_v56 = vadd.f32 %v359_v42, %v358_v41  ;;  %v320_v60 = vld [vmem:[%s1803_s29 + $0x210] sm:$0xff]  ;;  %v321_v61 = vld [vmem:[%s1803_s29 + $0x218] sm:$0xff]  ;;  %v448_v62 = vadd.f32 %v447_v58, %v446_v51  ;;  %v449_v63 = vsel %vm350_vm0, %v337_v45, 0.0  ;;  %v275_v10 = vld [vmem:[%s1803_s29 + $0xa8] sm:$0xff] }
  0x24   : > { %v361_v1 = vsel %vm350_vm0, %v256_v52, 0.0  ;;  %v362_v2 = vsel %vm350_vm0, %v288_v54, 0.0  ;;  %1415 = vmatprep.subr.msk.bf16.mxu0 %vm1807_vm1, %v1413_v55  ;;  %v445_v7 = vadd.f32 %v444_v50, %v443_v57  ;;  %v364_v9 = vsel %vm350_vm0, %v320_v60, 0.0  ;;  %v338_v11 = vld [vmem:[%s1803_s29 + $0x2a0] sm:$0xff]  ;;  %v307_v17 = vld [vmem:[%s1803_s29 + $0x1a8] sm:$0xff]  ;;  %v276_v37 = vld [vmem:[%s1803_s29 + $0xb0] sm:$0xff] }
  0x25   : > { %v1416_v5 = vpack.c.bf16 %v360_v56, %v355_v48  ;;  %v363_v8 = vadd.f32 %v362_v2, %v361_v1  ;;  %v1089_v12 = vld [vmem:[%s2462_s4] sm:$0xf]  ;;  %v450_v13 = vadd.f32 %v449_v63, %v448_v62  ;;  %v366_v14 = vsel %vm350_vm0, %v257_v53, 0.0  ;;  %v339_v18 = vld [vmem:[%s1803_s29 + $0x2a8] sm:$0xff]  ;;  %v277_v42 = vld [vmem:[%s1803_s29 + $0xb8] sm:$0xff] }
  0x26   : > { %v367_v15 = vsel %vm350_vm0, %v289_v59, 0.0  ;;  %v369_v16 = vsel %vm350_vm0, %v321_v61, 0.0  ;;  %v258_v19 = vld [vmem:[%s1803_s29 + $0x20] sm:$0xff]  ;;  %v451_v22 = vsel %vm350_vm0, %v274_v3, 0.0  ;;  %v452_v23 = vsel %vm350_vm0, %v306_v4, 0.0  ;;  %v259_v30 = vld [vmem:[%s1803_s29 + $0x28] sm:$0xff]  ;;  %1092 = vperm.xlu0 %1536, %v1089_v12  }
  0x27   : > { %1418 = vmatpush3.bf16.xpose.msk.msra.mxu0 %vm1807_vm1, %v1416_v5  ;;  %v365_v20 = vadd.f32 %v364_v9, %v363_v8  ;;  %v368_v21 = vadd.f32 %v367_v15, %v366_v14  ;;  %v290_v24 = vld [vmem:[%s1803_s29 + $0x120] sm:$0xff]  ;;  %v1419_v26 = vpack.c.bf16 %v450_v13, %v445_v7  ;;  %v453_v27 = vadd.f32 %v452_v23, %v451_v22  ;;  %v291_v31 = vld [vmem:[%s1803_s29 + $0x128] sm:$0xff]  ;;  %v308_v43 = vld [vmem:[%s1803_s29 + $0x1b0] sm:$0xff] }
  0x28   : > { %v322_v25 = vld [vmem:[%s1803_s29 + $0x220] sm:$0xff]  ;;  %v454_v28 = vsel %vm350_vm0, %v338_v11, 0.0  ;;  %v456_v29 = vsel %vm350_vm0, %v275_v10, 0.0  ;;  %v457_v33 = vsel %vm350_vm0, %v307_v17, 0.0  ;;  %v459_v34 = vsel %vm350_vm0, %v339_v18, 0.0  ;;  %v323_v35 = vld [vmem:[%s1803_s29 + $0x228] sm:$0xff] }
  0x29   : > { %v370_v32 = vadd.f32 %v369_v16, %v368_v21  ;;  %v371_v36 = vsel %vm350_vm0, %v258_v19, 0.0  ;;  %1421 = vmatprep.subr.msk.bf16.mxu0 %vm1807_vm1, %v1419_v26  ;;  %v455_v38 = vadd.f32 %v454_v28, %v453_v27  ;;  %v458_v39 = vadd.f32 %v457_v33, %v456_v29  ;;  %v340_v44 = vld [vmem:[%s1803_s29 + $0x2b0] sm:$0xff]  ;;  %v309_v49 = vld [vmem:[%s1803_s29 + $0x1b8] sm:$0xff]  ;;  %v278_v9 = vld [vmem:[%s1803_s29 + $0xc0] sm:$0xff] }
  0x2a   : > { %v372_v40 = vsel %vm350_vm0, %v290_v24, 0.0  ;;  %v374_v41 = vsel %vm350_vm0, %v322_v25, 0.0  ;;  %v376_v47 = vsel %vm350_vm0, %v259_v30, 0.0  ;;  %v377_v48 = vsel %vm350_vm0, %v291_v31, 0.0  ;;  %v341_v53 = vld [vmem:[%s1803_s29 + $0x2b8] sm:$0xff]  ;;  %v260_v55 = vld [vmem:[%s1803_s29 + $0x30] sm:$0xff] }
  0x2b   : > { %v1422_v45 = vpack.c.bf16 %v370_v32, %v365_v20  ;;  %v373_v46 = vadd.f32 %v372_v40, %v371_v36  ;;  %v460_v50 = vadd.f32 %v459_v34, %v458_v39  ;;  %v378_v51 = vadd.f32 %v377_v48, %v376_v47  ;;  %v292_v56 = vld [vmem:[%s1803_s29 + $0x130] sm:$0xff]  ;;  %v261_v2 = vld [vmem:[%s1803_s29 + $0x38] sm:$0xff]  ;;  %v310_v10 = vld [vmem:[%s1803_s29 + $0x1c0] sm:$0xff] }
  0x2c   : > { %v379_v52 = vsel %vm350_vm0, %v323_v35, 0.0  ;;  %v461_v54 = vsel %vm350_vm0, %v276_v37, 0.0  ;;  %v462_v58 = vsel %vm350_vm0, %v308_v43, 0.0  ;;  %v464_v59 = vsel %vm350_vm0, %v340_v44, 0.0  ;;  %v293_v3 = vld [vmem:[%s1803_s29 + $0x138] sm:$0xff]  ;;  %v324_v12 = vld [vmem:[%s1803_s29 + $0x230] sm:$0xff] }
  0x2d   : > { %v375_v57 = vadd.f32 %v374_v41, %v373_v46  ;;  %v466_v60 = vsel %vm350_vm0, %v277_v42, 0.0  ;;  %v1425_v61 = vpack.c.bf16 %v460_v50, %v455_v38  ;;  %v380_v62 = vadd.f32 %v379_v52, %v378_v51  ;;  %v325_v13 = vld [vmem:[%s1803_s29 + $0x238] sm:$0xff]  ;;  %v279_v14 = vld [vmem:[%s1803_s29 + $0xc8] sm:$0xff]  ;;  %v342_v20 = vld [vmem:[%s1803_s29 + $0x2c0] sm:$0xff] }
  0x2e   : > { %v463_v63 = vadd.f32 %v462_v58, %v461_v54  ;;  %v467_v1 = vsel %vm350_vm0, %v309_v49, 0.0  ;;  %v469_v5 = vsel %vm350_vm0, %v341_v53, 0.0  ;;  %v381_v7 = vsel %vm350_vm0, %v260_v55, 0.0  ;;  %v311_v19 = vld [vmem:[%s1803_s29 + $0x1c8] sm:$0xff]  ;;  %v262_v30 = vld [vmem:[%s1803_s29 + $0x40] sm:$0xff]  ;;  %v280_v39 = vld [vmem:[%s1803_s29 + $0xd0] sm:$0xff] }
  0x2f   : > { %1424 = vmatpush3.bf16.xpose.msk.msra.mxu0 %vm1807_vm1, %v1422_v45  ;;  %v468_v4 = vadd.f32 %v467_v1, %v466_v60  ;;  %v382_v8 = vsel %vm350_vm0, %v292_v56, 0.0  ;;  %v1428_v15 = vpack.c.bf16 %v380_v62, %v375_v57  ;;  %v386_v17 = vsel %vm350_vm0, %v261_v2, 0.0  ;;  %v343_v23 = vld [vmem:[%s1803_s29 + $0x2c8] sm:$0xff]  ;;  %v294_v35 = vld [vmem:[%s1803_s29 + $0x140] sm:$0xff]  ;;  %v281_v40 = vld [vmem:[%s1803_s29 + $0xd8] sm:$0xff] }
  0x30   : > { %1427 = vmatprep.subr.msk.bf16.mxu0 %vm1807_vm1, %v1425_v61  ;;  %v465_v11 = vadd.f32 %v464_v59, %v463_v63  ;;  %v387_v18 = vsel %vm350_vm0, %v293_v3, 0.0  ;;  %v383_v21 = vadd.f32 %v382_v8, %v381_v7  ;;  %v471_v24 = vsel %vm350_vm0, %v278_v9, 0.0  ;;  %v263_v34 = vld [vmem:[%s1803_s29 + $0x48] sm:$0xff]  ;;  %v312_v41 = vld [vmem:[%s1803_s29 + $0x1d0] sm:$0xff]  ;;  %v313_v45 = vld [vmem:[%s1803_s29 + $0x1d8] sm:$0xff] }
  0x31   : > { %v470_v16 = vadd.f32 %v469_v5, %v468_v4  ;;  %v388_v22 = vadd.f32 %v387_v18, %v386_v17  ;;  %v472_v25 = vsel %vm350_vm0, %v310_v10, 0.0  ;;  %v384_v26 = vsel %vm350_vm0, %v324_v12, 0.0  ;;  %v295_v36 = vld [vmem:[%s1803_s29 + $0x148] sm:$0xff]  ;;  %v326_v47 = vld [vmem:[%s1803_s29 + $0x240] sm:$0xff]  ;;  %v344_v56 = vld [vmem:[%s1803_s29 + $0x2d0] sm:$0xff] }
  0x32   : > { %v389_v27 = vsel %vm350_vm0, %v325_v13, 0.0  ;;  %v473_v28 = vadd.f32 %v472_v25, %v471_v24  ;;  %v476_v29 = vsel %vm350_vm0, %v279_v14, 0.0  ;;  %v474_v32 = vsel %vm350_vm0, %v342_v20, 0.0  ;;  %v327_v52 = vld [vmem:[%s1803_s29 + $0x248] sm:$0xff]  ;;  %v345_v57 = vld [vmem:[%s1803_s29 + $0x2d8] sm:$0xff]  ;;  %v264_v7 = vld [vmem:[%s1803_s29 + $0x50] sm:$0xff] }
  0x33   : > { %v1431_v31 = vpack.c.bf16 %v470_v16, %v465_v11  ;;  %v477_v33 = vsel %vm350_vm0, %v311_v19, 0.0  ;;  %v479_v38 = vsel %vm350_vm0, %v343_v23, 0.0  ;;  %v385_v42 = vadd.f32 %v384_v26, %v383_v21  ;;  %v265_v8 = vld [vmem:[%s1803_s29 + $0x58] sm:$0xff]  ;;  %v296_v9 = vld [vmem:[%s1803_s29 + $0x150] sm:$0xff]  ;;  %v282_v11 = vld [vmem:[%s1803_s29 + $0xe0] sm:$0xff] }
  0x34   : > { %v478_v37 = vadd.f32 %v477_v33, %v476_v29  ;;  %v390_v43 = vadd.f32 %v389_v27, %v388_v22  ;;  %v391_v44 = vsel %vm350_vm0, %v262_v30, 0.0  ;;  %v475_v46 = vadd.f32 %v474_v32, %v473_v28  ;;  %v297_v10 = vld [vmem:[%s1803_s29 + $0x158] sm:$0xff]  ;;  %v314_v12 = vld [vmem:[%s1803_s29 + $0x1e0] sm:$0xff]  ;;  %v315_v16 = vld [vmem:[%s1803_s29 + $0x1e8] sm:$0xff] }
  0x35   : > { %v392_v48 = vsel %vm350_vm0, %v294_v35, 0.0  ;;  %v396_v49 = vsel %vm350_vm0, %v263_v34, 0.0  ;;  %v397_v50 = vsel %vm350_vm0, %v295_v36, 0.0  ;;  %v481_v53 = vsel %vm350_vm0, %v280_v39, 0.0  ;;  %v328_v21 = vld [vmem:[%s1803_s29 + $0x250] sm:$0xff]  ;;  %v329_v26 = vld [vmem:[%s1803_s29 + $0x258] sm:$0xff] }
  0x36   : > { %v480_v51 = vadd.f32 %v479_v38, %v478_v37  ;;  %v482_v54 = vsel %vm350_vm0, %v312_v41, 0.0  ;;  %v486_v55 = vsel %vm350_vm0, %v281_v40, 0.0  ;;  %v487_v58 = vsel %vm350_vm0, %v313_v45, 0.0  ;;  %v346_v27 = vld [vmem:[%s1803_s29 + $0x2e0] sm:$0xff]  ;;  %v267_v41 = vld [vmem:[%s1803_s29 + $0x68] sm:$0xff]  ;;  %v284_v45 = vld [vmem:[%s1803_s29 + $0xf0] sm:$0xff] }
  0x37   : > { %1430 = vmatpush3.bf16.xpose.msk.msra.mxu0 %vm1807_vm1, %v1428_v15  ;;  %v393_v59 = vadd.f32 %v392_v48, %v391_v44  ;;  %v394_v60 = vsel %vm350_vm0, %v326_v47, 0.0  ;;  %v398_v61 = vadd.f32 %v397_v50, %v396_v49  ;;  %v1434_v62 = vpack.c.bf16 %v390_v43, %v385_v42  ;;  %v283_v15 = vld [vmem:[%s1803_s29 + $0xe8] sm:$0xff]  ;;  %v266_v40 = vld [vmem:[%s1803_s29 + $0x60] sm:$0xff]  ;;  %v316_v47 = vld [vmem:[%s1803_s29 + $0x1f0] sm:$0xff] }
  0x38   : > { %1433 = vmatprep.subr.msk.bf16.mxu0 %vm1807_vm1, %v1431_v31  ;;  %v399_v63 = vsel %vm350_vm0, %v327_v52, 0.0  ;;  %v483_v1 = vadd.f32 %v482_v54, %v481_v53  ;;  %v488_v2 = vadd.f32 %v487_v58, %v486_v55  ;;  %v1437_v3 = vpack.c.bf16 %v480_v51, %v475_v46  ;;  %v347_v31 = vld [vmem:[%s1803_s29 + $0x2e8] sm:$0xff]  ;;  %v298_v43 = vld [vmem:[%s1803_s29 + $0x160] sm:$0xff]  ;;  %v285_v46 = vld [vmem:[%s1803_s29 + $0xf8] sm:$0xff] }
  0x39   : > { %v484_v4 = vsel %vm350_vm0, %v344_v56, 0.0  ;;  %v489_v5 = vsel %vm350_vm0, %v345_v57, 0.0  ;;  %v395_v13 = vadd.f32 %v394_v60, %v393_v59  ;;  %v400_v14 = vadd.f32 %v399_v63, %v398_v61  ;;  %v299_v44 = vld [vmem:[%s1803_s29 + $0x168] sm:$0xff]  ;;  %v317_v48 = vld [vmem:[%s1803_s29 + $0x1f8] sm:$0xff]  ;;  %v330_v54 = vld [vmem:[%s1803_s29 + $0x260] sm:$0xff] }
  0x3a   : > { %v485_v17 = vadd.f32 %v484_v4, %v483_v1  ;;  %v490_v18 = vadd.f32 %v489_v5, %v488_v2  ;;  %v401_v19 = vsel %vm350_vm0, %v264_v7, 0.0  ;;  %v402_v20 = vsel %vm350_vm0, %v296_v9, 0.0  ;;  %v331_v58 = vld [vmem:[%s1803_s29 + $0x268] sm:$0xff]  ;;  %v348_v63 = vld [vmem:[%s1803_s29 + $0x2f0] sm:$0xff]  ;;  %v349_v1 = vld [vmem:[%s1803_s29 + $0x2f8] sm:$0xff] }
  0x3b   : > { %v406_v22 = vsel %vm350_vm0, %v265_v8, 0.0  ;;  %v407_v23 = vsel %vm350_vm0, %v297_v10, 0.0  ;;  %v491_v24 = vsel %vm350_vm0, %v282_v11, 0.0  ;;  %v492_v25 = vsel %vm350_vm0, %v314_v12, 0.0  ;;  %v268_v11 = vld [vmem:[%s1803_s29 + $0x70] sm:$0xff] }
  0x3c   : > { %v496_v28 = vsel %vm350_vm0, %v283_v15, 0.0  ;;  %v497_v29 = vsel %vm350_vm0, %v315_v16, 0.0  ;;  %v1440_v30 = vpack.c.bf16 %v400_v14, %v395_v13  ;;  %v403_v32 = vadd.f32 %v402_v20, %v401_v19  ;;  %v300_v12 = vld [vmem:[%s1803_s29 + $0x170] sm:$0xff]  ;;  %v269_v15 = vld [vmem:[%s1803_s29 + $0x78] sm:$0xff] }
  0x3d   : > { %v404_v33 = vsel %vm350_vm0, %v328_v21, 0.0  ;;  %v408_v34 = vadd.f32 %v407_v23, %v406_v22  ;;  %v493_v35 = vadd.f32 %v492_v25, %v491_v24  ;;  %v1443_v36 = vpack.c.bf16 %v490_v18, %v485_v17  ;;  %v301_v16 = vld [vmem:[%s1803_s29 + $0x178] sm:$0xff]  ;;  %v332_v25 = vld [vmem:[%s1803_s29 + $0x270] sm:$0xff] }
  0x3e   : > { %v409_v37 = vsel %vm350_vm0, %v329_v26, 0.0  ;;  %v494_v38 = vsel %vm350_vm0, %v346_v27, 0.0  ;;  %v498_v39 = vadd.f32 %v497_v29, %v496_v28  ;;  %v499_v42 = vsel %vm350_vm0, %v347_v31, 0.0  ;;  %v333_v26 = vld [vmem:[%s1803_s29 + $0x278] sm:$0xff]  ;;  %s1364_s29 = sshll.u32 %s1680_s21, 7  ;;  %s1693_s21 = smov [#allocation2]  }
  0x3f   : > { %1436 = vmatpush3.bf16.xpose.msk.msra.mxu0 %vm1807_vm1, %v1434_v62  ;;  %v405_v49 = vadd.f32 %v404_v33, %v403_v32  ;;  %v410_v50 = vadd.f32 %v409_v37, %v408_v34  ;;  %v495_v51 = vadd.f32 %v494_v38, %v493_v35  ;;  %v411_v52 = vsel %vm350_vm0, %v266_v40, 0.0  ;;  %v513_v37 = vld [vmem:[%s2459_s1 + $0x10] sm:$0xff]  ;;  %v516_v38 = vld [vmem:[%s2459_s1 + $0x28] sm:$0xff]  ;;  %v518_v40 = vld [vmem:[%s2459_s1 + $0x38] sm:$0xff]  ;;  %s2409_s10 = scalar_lea.hbm %s2463_s5, %s1364_s29  ;;  %s1614_s13 = sshll.u32 %s1693_s21, 4  ;;  %s1615_s13 = int_to_ptr.vmem [resolvable:$false] %s1614_s13 }
  0x40   : > { %1439 = vmatprep.subr.msk.bf16.mxu0 %vm1807_vm1, %v1437_v3  ;;  %v500_v53 = vadd.f32 %v499_v42, %v498_v39  ;;  %v412_v55 = vsel %vm350_vm0, %v298_v43, 0.0  ;;  %v416_v56 = vsel %vm350_vm0, %v267_v41, 0.0  ;;  %v417_v57 = vsel %vm350_vm0, %v299_v44, 0.0  ;;  %v517_v39 = vld [vmem:[%s2459_s1 + $0x30] sm:$0xff]  ;;  %s1616_s14 = scalar_lea.vmem %s1615_s13, 256  ;;  %p1617_p1 = scmp.lt.s32.totalorder %s2411_s7, %s1615_s13 }
  0x41   : > { %v501_v59 = vsel %vm350_vm0, %v284_v45, 0.0  ;;  %v502_v60 = vsel %vm350_vm0, %v316_v47, 0.0  ;;  %v506_v61 = vsel %vm350_vm0, %v285_v46, 0.0  ;;  %v507_v62 = vsel %vm350_vm0, %v317_v48, 0.0  ;;  %p1618_p2 = scmp.lt.s32.totalorder %s1616_s14, %s1610_s12 }
  0x42   : > { %v1446_v2 = vpack.c.bf16 %v410_v50, %v405_v49  ;;  %v413_v3 = vadd.f32 %v412_v55, %v411_v52  ;;  %v414_v4 = vsel %vm350_vm0, %v330_v54, 0.0  ;;  %v418_v5 = vadd.f32 %v417_v57, %v416_v56 }
  0x43   : > { %v1449_v7 = vpack.c.bf16 %v500_v53, %v495_v51  ;;  %v419_v8 = vsel %vm350_vm0, %v331_v58, 0.0  ;;  %v503_v9 = vadd.f32 %v502_v60, %v501_v59  ;;  %v508_v10 = vadd.f32 %v507_v62, %v506_v61  ;;  %p1619_p3 = por %p1618_p2, %p1617_p1 }
  0x44   : > { %v504_v13 = vsel %vm350_vm0, %v348_v63, 0.0  ;;  %v509_v14 = vsel %vm350_vm0, %v349_v1, 0.0  ;;  %v415_v17 = vadd.f32 %v414_v4, %v413_v3  ;;  %v420_v18 = vadd.f32 %v419_v8, %v418_v5 }
  0x45   : > { %v421_v19 = vsel %vm350_vm0, %v268_v11, 0.0  ;;  %v422_v20 = vsel %vm350_vm0, %v300_v12, 0.0  ;;  %v505_v21 = vadd.f32 %v504_v13, %v503_v9  ;;  %v510_v22 = vadd.f32 %v509_v14, %v508_v10  ;;  %p1620_p5 = pnand %p1619_p3, %p1613_p0 }
  0x46   : > { %v426_v23 = vsel %vm350_vm0, %v269_v15, 0.0  ;;  %v427_v24 = vsel %vm350_vm0, %v301_v16, 0.0  ;;  %v1452_v27 = vpack.c.bf16 %v420_v18, %v415_v17  ;;  %v423_v28 = vadd.f32 %v422_v20, %v421_v19 }
  0x47   : > { %1442 = vmatpush3.bf16.xpose.msk.msra.mxu0 %vm1807_vm1, %v1440_v30  ;;  %v428_v29 = vadd.f32 %v427_v24, %v426_v23  ;;  %v1455_v30 = vpack.c.bf16 %v510_v22, %v505_v21  ;;  %v424_v31 = vsel %vm350_vm0, %v332_v25, 0.0  ;;  %v429_v32 = vsel %vm350_vm0, %v333_v26, 0.0 }
  0x48   : > { %1445 = vmatprep.subr.msk.bf16.mxu0 %vm1807_vm1, %v1443_v36  ;;  %v425_v33 = vadd.f32 %v424_v31, %v423_v28  ;;  %v512_v36 = vld [vmem:[%s2459_s1 + $0x8] sm:$0xff]  ;;  %v1691_v41 = vmov 0.0  }
  0x49   : > { %v430_v34 = vadd.f32 %v429_v32, %v428_v29  ;;  %1163 = vmatprep.mubr.f32.mxu1 %v1691_v41 }
  0x4b   : > { %v1458_v35 = vpack.c.bf16 %v430_v34, %v425_v33 }
  0x4f   : > { %1448 = vmatpush3.bf16.xpose.msk.msra.mxu0 %vm1807_vm1, %v1446_v2 }
  0x50   : > { %1451 = vmatprep.subr.msk.bf16.mxu0 %vm1807_vm1, %v1449_v7 }
  0x57   : > { %1454 = vmatpush3.bf16.xpose.msk.msra.mxu0 %vm1807_vm1, %v1452_v27 }
  0x58   : > { %1457 = vmatprep.subr.msk.bf16.mxu0 %vm1807_vm1, %v1455_v30 }
  0x5f   : > { %1460 = vmatpush3.bf16.xpose.msk.msra.mxu0 %vm1807_vm1, %v1458_v35 }
  0x66   : > { %1398 = vmatmul.mubr.msk.f32.vlgmr.msra.gmra.mrb[0].mxu0 %vm350_vm0, %v1783_v0  ;;  %v515_v0 = vld [vmem:[%s2459_s1 + $0x20] sm:$0xff] }
  0x67   : > { %1399 = vmatprep.mubr.msk.f32.mxu0 %vm350_vm0, %v512_v36 }
  0x6a   : > { %1400 = vmatmul.mubr.msk.f32.gmra.mrb[2].mxu0 %vm350_vm0, %v512_v36 }
  0x6b   : > { %1401 = vmatprep.mubr.msk.f32.mxu0 %vm350_vm0, %v513_v37 }
  0x6e   : > { %1402 = vmatmul.mubr.msk.f32.gmra.mrb[4].mxu0 %vm350_vm0, %v513_v37 }
  0x6f   : > { %1403 = vmatprep.mubr.msk.f32.mxu0 %vm350_vm0, %v514_v6 }
  0x72   : > { %1404 = vmatmul.mubr.msk.f32.gmra.mrb[6].mxu0 %vm350_vm0, %v514_v6 }
  0x73   : > { %1405 = vmatprep.mubr.msk.f32.mxu0 %vm350_vm0, %v515_v0 }
  0x76   : > { %1406 = vmatmul.mubr.msk.f32.gmra.mrb[8].mxu0 %vm350_vm0, %v515_v0 }
  0x77   : > { %1407 = vmatprep.mubr.msk.f32.mxu0 %vm350_vm0, %v516_v38 }
  0x7a   : > { %1408 = vmatmul.mubr.msk.f32.gmra.mrb[10].mxu0 %vm350_vm0, %v516_v38 }
  0x7b   : > { %1409 = vmatprep.mubr.msk.f32.mxu0 %vm350_vm0, %v517_v39 }
  0x7e   : > { %1410 = vmatmul.mubr.msk.f32.gmra.mrb[12].mxu0 %vm350_vm0, %v517_v39 }
  0x7f   : > { %1411 = vmatprep.mubr.msk.f32.mxu0 %vm350_vm0, %v518_v40 }
  0x82   : > { %1412 = vmatmul.mubr.msk.f32.gmra.mrb[14].mxu0 %vm350_vm0, %v518_v40 }
  0x8f   : > { %v530_v42 = vpop.permute.xlu0 %529 }
  0x90   : > { %v540_v53 = vpop.permute.xlu1 %539 }
  0x93   : > { %v535_v49 = vpop.permute.xlu0 %534 }
  0x94   : > { %v545_v3 = vpop.permute.xlu1 %544 }
  0x97   : > { %v550_v14 = vpop.permute.xlu0 %549 }
  0x98   : > { %v555_v28 = vpop.permute.xlu1 %554 }
  0x9b   : > { %v560_v39 = vpop.permute.xlu0 %559 }
 0x139   : > { %v753_v43 = vpop.f32.mrb[0].mxu0 }
 0x13a   : > { %v755_v44 = vpop.f32.mrb[1].mxu0  ;;  %v2089_v46 = vadd.f32 %v753_v43, %v530_v42 }
 0x13b   : > { %v2087_v45 = vadd.f32 %v755_v44, %v530_v42 }
 0x13c   : > { %v848_v55 = vand.u32 2147483647, %v2089_v46  ;;  %vm816_vm8 = vcmp.ne.f32.partialorder %v2089_v46, %v2089_v46 }
 0x13d   : > { %v849_v47 = vand.u32 2147483647, %v2087_v45  ;;  %v759_v48 = vpop.f32.mrb[2].mxu0  ;;  %vm817_vm2 = vcmp.ne.f32.partialorder %v2087_v45, %v2087_v45 }
 0x13e   : > { %v761_v50 = vpop.f32.mrb[3].mxu0  ;;  %v2092_v52 = vadd.f32 %v759_v48, %v535_v49  ;;  %v864_v1 = vsub.f32 0.0, %v848_v55 }
 0x13f   : > { %v865_v51 = vsub.f32 0.0, %v849_v47  ;;  %v2094_v54 = vadd.f32 %v761_v50, %v535_v49 }
 0x140   : > { %v850_v61 = vand.u32 2147483647, %v2092_v52  ;;  %v880_v13 = vmul.f32 1.442695, %v864_v1  ;;  %vm818_vm9 = vcmp.ne.f32.partialorder %v2092_v52, %v2092_v52 }
 0x141   : > { %v882_v56 = vmul.f32 1.442695, %v865_v51  ;;  %v851_v57 = vand.u32 2147483647, %v2094_v54  ;;  %v765_v58 = vpop.f32.mrb[4].mxu0  ;;  %vm819_vm4 = vcmp.ne.f32.partialorder %v2094_v54, %v2094_v54 }
 0x142   : > { %v2098_v59 = vadd.f32 %v765_v58, %v540_v53  ;;  %v767_v60 = vpop.f32.mrb[5].mxu0  ;;  %v866_v10 = vsub.f32 0.0, %v850_v61  ;;  %v565_v58 = vpop.permute.xlu1 %564 }
 0x143   : > { %1538 = vpow2.f32 %v882_v56  ;;  %v867_v62 = vsub.f32 0.0, %v851_v57  ;;  %v2101_v63 = vadd.f32 %v767_v60, %v540_v53  ;;  %v800_v53 = vmax.f32 %v2089_v46, 0.0 }
 0x144   : > { %v852_v2 = vand.u32 2147483647, %v2098_v59  ;;  %v884_v21 = vmul.f32 1.442695, %v866_v10  ;;  %v802_v57 = vmax.f32 %v2092_v52, 0.0  ;;  %vm820_vm0 = vcmp.ne.f32.partialorder %v2098_v59, %v2098_v59 }
 0x145   : > { %v771_v4 = vpop.f32.mrb[6].mxu0  ;;  %v886_v5 = vmul.f32 1.442695, %v867_v62  ;;  %v853_v7 = vand.u32 2147483647, %v2101_v63  ;;  %v801_v62 = vmax.f32 %v2087_v45, 0.0  ;;  %vm821_vm11 = vcmp.ne.f32.partialorder %v2101_v63, %v2101_v63 }
 0x146   : > { %v2105_v8 = vadd.f32 %v771_v4, %v545_v3  ;;  %v773_v9 = vpop.f32.mrb[7].mxu0  ;;  %v868_v15 = vsub.f32 0.0, %v852_v2 }
 0x147   : > { %v2107_v11 = vadd.f32 %v773_v9, %v545_v3  ;;  %1540 = vpow2.f32 %v886_v5  ;;  %v869_v18 = vsub.f32 0.0, %v853_v7 }
 0x148   : > { %v854_v12 = vand.u32 2147483647, %v2105_v8  ;;  %1542 = vpow2.f32 %v880_v13  ;;  %v888_v27 = vmul.f32 1.442695, %v868_v15  ;;  %vm822_vm1 = vcmp.ne.f32.partialorder %v2105_v8, %v2105_v8 }
 0x149   : > { %v855_v16 = vand.u32 2147483647, %v2107_v11  ;;  %v777_v17 = vpop.f32.mrb[8].mxu0  ;;  %v890_v31 = vmul.f32 1.442695, %v869_v18  ;;  %1544 = vpow2.f32 %v884_v21  ;;  %vm823_vm12 = vcmp.ne.f32.partialorder %v2107_v11, %v2107_v11 }
 0x14a   : > { %v2111_v19 = vadd.f32 %v777_v17, %v550_v14  ;;  %v779_v20 = vpop.f32.mrb[9].mxu0  ;;  %v870_v22 = vsub.f32 0.0, %v854_v12 }
 0x14b   : > { %v2113_v23 = vadd.f32 %v779_v20, %v550_v14  ;;  %v871_v24 = vsub.f32 0.0, %v855_v16  ;;  %v803_v20 = vmax.f32 %v2094_v54, 0.0 }
 0x14c   : > { %v856_v25 = vand.u32 2147483647, %v2111_v19  ;;  %v892_v36 = vmul.f32 1.442695, %v870_v22 }
 0x14d   : > { %v2116_v26 = vpop.eup %1538  ;;  %v857_v29 = vand.u32 2147483647, %v2113_v23  ;;  %v783_v30 = vpop.f32.mrb[10].mxu0  ;;  %v894_v6 = vmul.f32 1.442695, %v871_v24  ;;  %v804_v24 = vmax.f32 %v2098_v59, 0.0 }
 0x14e   : > { %v872_v32 = vsub.f32 0.0, %v856_v25  ;;  %v2119_v33 = vadd.f32 %v783_v30, %v555_v28  ;;  %v785_v34 = vpop.f32.mrb[11].mxu0  ;;  %v921_v35 = vadd.f32 1.0, %v2116_v26  ;;  %v924_v48 = vmul.f32 -0.5, %v2116_v26 }
 0x14f   : > { %v2122_v37 = vadd.f32 %v785_v34, %v555_v28  ;;  %v873_v0 = vsub.f32 0.0, %v857_v29  ;;  %v927_v16 = vand.u32 2147483647, %v2116_v26 }
 0x150   : > { %v858_v38 = vand.u32 2147483647, %v2119_v33  ;;  %1546 = vlog2.f32 %v921_v35  ;;  %v896_v40 = vmul.f32 1.442695, %v872_v32  ;;  %v925_v5 = vadd.f32 1.0, %v924_v48 }
 0x151   : > { %1548 = vpow2.f32 %v888_v27  ;;  %v859_v41 = vand.u32 2147483647, %v2122_v37  ;;  %v789_v42 = vpop.f32.mrb[12].mxu0  ;;  %v2131_v51 = vpop.eup %1540  ;;  %v898_v55 = vmul.f32 1.442695, %v873_v0  ;;  %v806_v48 = vmax.f32 %v2105_v8, 0.0 }
 0x152   : > { %1550 = vpow2.f32 %v890_v31  ;;  %v874_v43 = vsub.f32 0.0, %v858_v38  ;;  %v2126_v44 = vadd.f32 %v789_v42, %v560_v39  ;;  %v791_v47 = vpop.f32.mrb[13].mxu0  ;;  %v2140_v7 = vpop.eup %1542  ;;  %v939_v13 = vadd.f32 1.0, %v2131_v51 }
 0x153   : > { %1552 = vpow2.f32 %v892_v36  ;;  %v875_v49 = vsub.f32 0.0, %v859_v41  ;;  %v2129_v50 = vadd.f32 %v791_v47, %v560_v39  ;;  %v2147_v17 = vpop.eup %1544  ;;  %v942_v21 = vmul.f32 -0.5, %v2131_v51 }
 0x154   : > { %1554 = vpow2.f32 %v894_v6  ;;  %v860_v56 = vand.u32 2147483647, %v2126_v44  ;;  %v900_v1 = vmul.f32 1.442695, %v874_v43  ;;  %v912_v31 = vadd.f32 1.0, %v2140_v7 }
 0x155   : > { %1556 = vpow2.f32 %v896_v40  ;;  %v861_v60 = vand.u32 2147483647, %v2129_v50  ;;  %v795_v61 = vpop.f32.mrb[14].mxu0  ;;  %v902_v9 = vmul.f32 1.442695, %v875_v49  ;;  %v926_v35 = vmul.f32 %v2116_v26, %v925_v5 }
 0x156   : > { %v876_v2 = vsub.f32 0.0, %v860_v56  ;;  %v2138_v3 = vadd.f32 %v795_v61, %v565_v58  ;;  %v797_v4 = vpop.f32.mrb[15].mxu0  ;;  %1558 = vpow2.f32 %v898_v55  ;;  %vm2161_vm3 = vcmp.lt.f32.partialorder %v927_v16, 0.0004427343 }
 0x157   : > { %v877_v10 = vsub.f32 0.0, %v861_v60  ;;  %v2142_v12 = vadd.f32 %v797_v4, %v565_v58  ;;  %1560 = vlog2.f32 %v939_v13  ;;  %v943_v38 = vadd.f32 1.0, %v942_v21 }
 0x158   : > { %v904_v14 = vmul.f32 1.442695, %v876_v2  ;;  %v862_v15 = vand.u32 2147483647, %v2138_v3  ;;  %1562 = vpow2.f32 %v900_v1  ;;  %v915_v39 = vmul.f32 -0.5, %v2140_v7 }
 0x159   : > { %v863_v18 = vand.u32 2147483647, %v2142_v12  ;;  %v906_v25 = vmul.f32 1.442695, %v877_v10  ;;  %1564 = vpow2.f32 %v902_v9  ;;  %v945_v42 = vand.u32 2147483647, %v2131_v51 }
 0x15a   : > { %v1547_v22 = vpop.eup %1546  ;;  %v878_v27 = vsub.f32 0.0, %v862_v15  ;;  %1566 = vpow2.f32 %v904_v14  ;;  %v930_v26 = vadd.f32 1.0, %v2147_v17  ;;  %v805_v47 = vmax.f32 %v2101_v63, 0.0 }
 0x15b   : > { %v2153_v28 = vpop.eup %1548  ;;  %v879_v29 = vsub.f32 0.0, %v863_v18  ;;  %v923_v30 = vmul.f32 0.6931472, %v1547_v22  ;;  %1568 = vlog2.f32 %v912_v31  ;;  %v933_v49 = vmul.f32 -0.5, %v2147_v17 }
 0x15c   : > { %v2156_v32 = vpop.eup %1550  ;;  %v908_v34 = vmul.f32 1.442695, %v878_v27  ;;  %1570 = vpow2.f32 %v906_v25  ;;  %v807_v55 = vmax.f32 %v2107_v11, 0.0  ;;  %v918_v56 = vand.u32 2147483647, %v2140_v7 }
 0x15d   : > { %v2165_v6 = vpop.eup %1552  ;;  %v910_v0 = vmul.f32 1.442695, %v879_v29  ;;  %v929_v41 = vsel %vm2161_vm3, %v926_v35, %v923_v30  ;;  %v957_v58 = vadd.f32 1.0, %v2156_v32  ;;  %v944_v60 = vmul.f32 %v2131_v51, %v943_v38 }
 0x15e   : > { %v2168_v40 = vpop.eup %1554  ;;  %1572 = vpow2.f32 %v908_v34  ;;  %v1057_v61 = vadd.f32 %v929_v41, %v801_v62  ;;  %v916_v1 = vadd.f32 1.0, %v915_v39  ;;  %vm2187_vm5 = vcmp.lt.f32.partialorder %v945_v42, 0.0004427343 }
 0x15f   : > { %v2174_v43 = vpop.eup %1556  ;;  %1574 = vlog2.f32 %v930_v26  ;;  %v936_v5 = vand.u32 2147483647, %v2147_v17  ;;  %v975_v9 = vadd.f32 1.0, %v2168_v40  ;;  %v934_v13 = vadd.f32 1.0, %v933_v49 }
 0x160   : > { %1576 = vpow2.f32 %v910_v0  ;;  %v2185_v2 = vpop.eup %1558  ;;  %v960_v14 = vmul.f32 -0.5, %v2156_v32  ;;  %v963_v15 = vand.u32 2147483647, %v2156_v32  ;;  %v948_v51 = vadd.f32 1.0, %v2153_v28 }
 0x161   : > { %1578 = vlog2.f32 %v957_v58  ;;  %v1561_v10 = vpop.eup %1560  ;;  %vm2198_vm6 = vcmp.lt.f32.partialorder %v918_v56, 0.0004427343  ;;  %v978_v21 = vmul.f32 -0.5, %v2168_v40  ;;  %v1073_v25 = vsel %vm817_vm2, %v2087_v45, %v1057_v61 }
 0x162   : > { %v2196_v62 = vpop.eup %1562  ;;  %v941_v16 = vmul.f32 0.6931472, %v1561_v10  ;;  %1580 = vlog2.f32 %v975_v9  ;;  %v917_v27 = vmul.f32 %v2140_v7, %v916_v1  ;;  %v951_v29 = vmul.f32 -0.5, %v2153_v28 }
 0x163   : > { %v2203_v22 = vpop.eup %1564  ;;  %1582 = vlog2.f32 %v948_v51  ;;  %vm2215_vm7 = vcmp.lt.f32.partialorder %v936_v5, 0.0004427343  ;;  %v981_v35 = vand.u32 2147483647, %v2168_v40  ;;  %v966_v36 = vadd.f32 1.0, %v2165_v6 }
 0x164   : > { %v2211_v30 = vpop.eup %1566  ;;  %v947_v31 = vsel %vm2187_vm5, %v944_v60, %v941_v16  ;;  %v935_v7 = vmul.f32 %v2147_v17, %v934_v13  ;;  %v961_v38 = vadd.f32 1.0, %v960_v14  ;;  %vm2228_vm10 = vcmp.lt.f32.partialorder %v963_v15, 0.0004427343 }
 0x165   : > { %v1569_v0 = vpop.eup %1568  ;;  %v1059_v45 = vadd.f32 %v947_v31, %v803_v20  ;;  %v979_v26 = vadd.f32 1.0, %v978_v21  ;;  %1584 = vlog2.f32 %v966_v36  ;;  %v993_v20 = vadd.f32 1.0, %v2185_v2 }
 0x166   : > { %v2232_v41 = vpop.eup %1570  ;;  %v914_v42 = vmul.f32 0.6931472, %v1569_v0  ;;  %v952_v17 = vadd.f32 1.0, %v951_v29  ;;  %v954_v58 = vand.u32 2147483647, %v2153_v28  ;;  %v969_v60 = vmul.f32 -0.5, %v2165_v6 }
 0x167   : > { %v1075_v56 = vsel %vm819_vm4, %v2094_v54, %v1059_v45  ;;  %v972_v5 = vand.u32 2147483647, %v2165_v6  ;;  %1586 = vlog2.f32 %v993_v20  ;;  %v962_v54 = vmul.f32 %v2156_v32, %v961_v38 }
 0x168   : > { %v2235_v49 = vpop.eup %1572  ;;  %v1461_v1 = vpack.c.bf16 %v1075_v56, %v1073_v25  ;;  %v920_v4 = vsel %vm2198_vm6, %v917_v27, %v914_v42  ;;  %vm2253_vm13 = vcmp.lt.f32.partialorder %v981_v35, 0.0004427343  ;;  %v996_v14 = vmul.f32 -0.5, %v2185_v2 }
 0x169   : > { %v1575_v61 = vpop.eup %1574  ;;  %v1056_v51 = vadd.f32 %v920_v4, %v800_v53  ;;  %v980_v16 = vmul.f32 %v2168_v40, %v979_v26  ;;  %v1011_v18 = vadd.f32 1.0, %v2203_v22  ;;  %v984_v21 = vadd.f32 1.0, %v2174_v43 }
 0x16a   : > { %v2246_v9 = vpop.eup %1576  ;;  %v932_v10 = vmul.f32 0.6931472, %v1575_v61  ;;  %1462 = vmatprep.subr.bf16.mxu1 %v1461_v1  ;;  %vm2265_vm14 = vcmp.lt.f32.partialorder %v954_v58, 0.0004427343  ;;  %v970_v29 = vadd.f32 1.0, %v969_v60  ;;  %v953_v53 = vmul.f32 %v2153_v28, %v952_v17 }
 0x16b   : > { %v1579_v15 = vpop.eup %1578  ;;  %vm2272_vm15 = vcmp.lt.f32.partialorder %v972_v5, 0.0004427343  ;;  %1588 = vlog2.f32 %v1011_v18  ;;  %v997_v45 = vadd.f32 1.0, %v996_v14  ;;  %v1014_v20 = vmul.f32 -0.5, %v2203_v22 }
 0x16c   : > { %v938_v32 = vsel %vm2215_vm7, %v935_v7, %v932_v10  ;;  %v959_v25 = vmul.f32 0.6931472, %v1579_v15  ;;  %v1581_v31 = vpop.eup %1580  ;;  %1590 = vlog2.f32 %v984_v21  ;;  %v971_v26 = vmul.f32 %v2165_v6, %v970_v29 }
 0x16d   : > { %v1058_v35 = vadd.f32 %v938_v32, %v802_v57  ;;  %v1583_v36 = vpop.eup %1582  ;;  %v977_v0 = vmul.f32 0.6931472, %v1581_v31  ;;  %v1072_v57 = vsel %vm816_vm8, %v2089_v46, %v1056_v51  ;;  %v998_v60 = vmul.f32 %v2185_v2, %v997_v45 }
 0x16e   : > { %v965_v34 = vsel %vm2228_vm10, %v962_v54, %v959_v25  ;;  %v950_v38 = vmul.f32 0.6931472, %v1583_v36  ;;  %v1017_v61 = vand.u32 2147483647, %v2203_v22  ;;  %v987_v6 = vmul.f32 -0.5, %v2174_v43 }
 0x16f   : > { %v1074_v28 = vsel %vm818_vm9, %v2092_v52, %v1058_v35  ;;  %v1061_v7 = vadd.f32 %v965_v34, %v805_v47  ;;  %v983_v42 = vsel %vm2253_vm13, %v980_v16, %v977_v0  ;;  %v1585_v56 = vpop.eup %1584  ;;  %v999_v52 = vand.u32 2147483647, %v2185_v2 }
 0x170   : > { %v1463_v39 = vpack.c.bf16 %v1074_v28, %v1072_v57  ;;  %v1063_v46 = vadd.f32 %v983_v42, %v807_v55  ;;  %v956_v17 = vsel %vm2265_vm14, %v953_v53, %v950_v38  ;;  %v1002_v47 = vadd.f32 1.0, %v2196_v62 }
 0x171   : > { %v968_v58 = vmul.f32 0.6931472, %v1585_v56  ;;  %v1587_v1 = vpop.eup %1586  ;;  %v1077_v55 = vsel %vm821_vm11, %v2101_v63, %v1061_v7  ;;  %v1060_v5 = vadd.f32 %v956_v17, %v804_v24  ;;  %v1015_v13 = vadd.f32 1.0, %v1014_v20 }
 0x172   : > { %1464 = vmatpush1.bf16.msra.mxu1 %v1463_v39  ;;  %v1079_v4 = vsel %vm823_vm12, %v2107_v11, %v1063_v46  ;;  %1592 = vlog2.f32 %v1002_v47  ;;  %v995_v54 = vmul.f32 0.6931472, %v1587_v1  ;;  %v809_v14 = vmax.f32 %v2113_v23, 0.0 }
 0x173   : > { %v1465_v2 = vpack.c.bf16 %v1079_v4, %v1077_v55  ;;  %v974_v10 = vsel %vm2272_vm15, %v971_v26, %v968_v58  ;;  %v811_v15 = vmax.f32 %v2122_v37, 0.0  ;;  %vm2321_vm2 = vcmp.lt.f32.partialorder %v999_v52, 0.0004427343 }
 0x174   : > { %v1062_v63 = vadd.f32 %v974_v10, %v806_v48  ;;  %v1001_v11 = vsel %vm2321_vm2, %v998_v60, %v995_v54  ;;  %v988_v24 = vadd.f32 1.0, %v987_v6  ;;  %v1005_v16 = vmul.f32 -0.5, %v2196_v62 }
 0x175   : > { %1466 = vmatprep.subr.bf16.mxu1 %v1465_v2  ;;  %v1029_v18 = vadd.f32 1.0, %v2232_v41  ;;  %v1589_v21 = vpop.eup %1588  ;;  %v1076_v32 = vsel %vm820_vm0, %v2098_v59, %v1060_v5  ;;  %vm2337_vm3 = vcmp.lt.f32.partialorder %v1017_v61, 0.0004427343  ;;  %v990_v27 = vand.u32 2147483647, %v2174_v43 }
 0x176   : > { %v1078_v48 = vsel %vm822_vm1, %v2105_v8, %v1062_v63  ;;  %v1591_v29 = vpop.eup %1590  ;;  %v1013_v35 = vmul.f32 0.6931472, %v1589_v21  ;;  %v1016_v53 = vmul.f32 %v2203_v22, %v1015_v13  ;;  %v1065_v40 = vadd.f32 %v1001_v11, %v809_v14 }
 0x177   : > { %v1467_v31 = vpack.c.bf16 %v1078_v48, %v1076_v32  ;;  %1594 = vlog2.f32 %v1029_v18  ;;  %v986_v36 = vmul.f32 0.6931472, %v1591_v29  ;;  %v1008_v59 = vand.u32 2147483647, %v2196_v62 }
 0x178   : > { %v1047_v34 = vadd.f32 1.0, %v2246_v9  ;;  %v808_v8 = vmax.f32 %v2111_v19, 0.0  ;;  %v1019_v0 = vsel %vm2337_vm3, %v1016_v53, %v1013_v35  ;;  %v989_v45 = vmul.f32 %v2174_v43, %v988_v24 }
 0x179   : > { %1468 = vmatpush1.bf16.msra.mxu1 %v1467_v31  ;;  %v1006_v57 = vadd.f32 1.0, %v1005_v16  ;;  %v1067_v28 = vadd.f32 %v1019_v0, %v811_v15  ;;  %vm2349_vm4 = vcmp.lt.f32.partialorder %v990_v27, 0.0004427343  ;;  %v1032_v22 = vmul.f32 -0.5, %v2232_v41 }
 0x17a   : > { %1596 = vlog2.f32 %v1047_v34  ;;  %v810_v38 = vmax.f32 %v2119_v33, 0.0  ;;  %vm825_vm5 = vcmp.ne.f32.partialorder %v2113_v23, %v2113_v23  ;;  %vm827_vm6 = vcmp.ne.f32.partialorder %v2122_v37, %v2122_v37 }
 0x17b   : > { %v992_v43 = vsel %vm2349_vm4, %v989_v45, %v986_v36  ;;  %v1081_v42 = vsel %vm825_vm5, %v2113_v23, %v1065_v40  ;;  %v1083_v26 = vsel %vm827_vm6, %v2122_v37, %v1067_v28  ;;  %vm1009_vm7 = vcmp.lt.f32.partialorder %v1008_v59, 0.0004427343 }
 0x17c   : > { %v1593_v39 = vpop.eup %1592  ;;  %v1020_v20 = vadd.f32 1.0, %v2211_v30  ;;  %v1469_v56 = vpack.c.bf16 %v1083_v26, %v1081_v42  ;;  %v1007_v17 = vmul.f32 %v2196_v62, %v1006_v57  ;;  %v1050_v52 = vmul.f32 -0.5, %v2246_v9 }
 0x17d   : > { %v1004_v46 = vmul.f32 0.6931472, %v1593_v39  ;;  %v1064_v47 = vadd.f32 %v992_v43, %v808_v8  ;;  %v1033_v58 = vadd.f32 1.0, %v1032_v22  ;;  %v1038_v60 = vadd.f32 1.0, %v2235_v49  ;;  %v1093_v43 = vpop.permute.xlu0 %1092 }
 0x17e   : > { %1598 = vlog2.f32 %v1020_v20  ;;  %1470 = vmatprep.subr.bf16.mxu1 %v1469_v56  ;;  %v1035_v23 = vand.u32 2147483647, %v2232_v41  ;;  %vm824_vm8 = vcmp.ne.f32.partialorder %v2111_v19, %v2111_v19  ;;  %vm826_vm9 = vcmp.ne.f32.partialorder %v2119_v33, %v2119_v33 }
 0x17f   : > { %v1010_v61 = vsel %vm1009_vm7, %v1007_v17, %v1004_v46  ;;  %1600 = vlog2.f32 %v1038_v60  ;;  %v1051_v62 = vadd.f32 1.0, %v1050_v52  ;;  %v1053_v1 = vand.u32 2147483647, %v2246_v9 }
 0x180   : > { %v1066_v37 = vadd.f32 %v1010_v61, %v810_v38  ;;  %v1023_v55 = vmul.f32 -0.5, %v2211_v30  ;;  %v1080_v4 = vsel %vm824_vm8, %v2111_v19, %v1064_v47  ;;  %v1034_v10 = vmul.f32 %v2232_v41, %v1033_v58 }
 0x181   : > { %v1595_v6 = vpop.eup %1594  ;;  %vm1036_vm10 = vcmp.lt.f32.partialorder %v1035_v23, 0.0004427343  ;;  %v1041_v13 = vmul.f32 -0.5, %v2235_v49  ;;  %v813_v15 = vmax.f32 %v2129_v50, 0.0  ;;  %v1052_v11 = vmul.f32 %v2246_v9, %v1051_v62 }
 0x182   : > { %v1082_v5 = vsel %vm826_vm9, %v2119_v33, %v1066_v37  ;;  %v1031_v2 = vmul.f32 0.6931472, %v1595_v6  ;;  %v1024_v24 = vadd.f32 1.0, %v1023_v55  ;;  %v815_v19 = vmax.f32 %v2142_v12, 0.0 }
 0x183   : > { %v1471_v54 = vpack.c.bf16 %v1082_v5, %v1080_v4  ;;  %vm1054_vm11 = vcmp.lt.f32.partialorder %v1053_v1, 0.0004427343  ;;  %v1026_v16 = vand.u32 2147483647, %v2211_v30  ;;  %v1042_v18 = vadd.f32 1.0, %v1041_v13 }
 0x184   : > { %v1597_v14 = vpop.eup %1596  ;;  %v1037_v63 = vsel %vm1036_vm10, %v1034_v10, %v1031_v2  ;;  %v1044_v48 = vand.u32 2147483647, %v2235_v49  ;;  %vm829_vm12 = vcmp.ne.f32.partialorder %v2129_v50, %v2129_v50  ;;  %vm831_vm13 = vcmp.ne.f32.partialorder %v2142_v12, %v2142_v12 }
 0x185   : > { %1472 = vmatpush1.bf16.msra.mxu1 %v1471_v54  ;;  %v1049_v51 = vmul.f32 0.6931472, %v1597_v14  ;;  %v1069_v33 = vadd.f32 %v1037_v63, %v813_v15  ;;  %v1025_v25 = vmul.f32 %v2211_v30, %v1024_v24  ;;  %v812_v29 = vmax.f32 %v2126_v44, 0.0 }
 0x186   : > { %vm1027_vm14 = vcmp.lt.f32.partialorder %v1026_v16, 0.0004427343  ;;  %v1043_v59 = vmul.f32 %v2235_v49, %v1042_v18  ;;  %v814_v34 = vmax.f32 %v2138_v3, 0.0  ;;  %vm1045_vm15 = vcmp.lt.f32.partialorder %v1044_v48, 0.0004427343 }
 0x187   : > { %v1055_v41 = vsel %vm1054_vm11, %v1052_v11, %v1049_v51  ;;  %v1085_v31 = vsel %vm829_vm12, %v2129_v50, %v1069_v33  ;;  %vm828_vm0 = vcmp.ne.f32.partialorder %v2126_v44, %v2126_v44  ;;  %vm830_vm1 = vcmp.ne.f32.partialorder %v2138_v3, %v2138_v3  ;;  %v1088_v49 = vld [vmem:[%s2461_s3] sm:$0xf] }
 0x188   : > { %v1599_v21 = vpop.eup %1598  ;;  %v1071_v32 = vadd.f32 %v1055_v41, %v815_v19  ;;  %vm1095_vm2 = vcmask 523264   ;;  %v1692_v57 = vmov 1966171168   ;;  %v1176_v7 = vlaneseq }
 0x189   : > { %v1022_v9 = vmul.f32 0.6931472, %v1599_v21  ;;  %v1601_v27 = vpop.eup %1600  ;;  %v1174_v28 = vunpack.c.l.s4 %v1692_v57 }
 0x18a   : > { %v1087_v35 = vsel %vm831_vm13, %v2142_v12, %v1071_v32  ;;  %v1040_v36 = vmul.f32 0.6931472, %v1601_v27  ;;  %v1177_v38 = vshrl.u32 %v1176_v7, 7  ;;  %vm1190_vm3 = vcmp.lt.s32.totalorder %v1176_v7, 256 }
 0x18b   : > { %v1473_v53 = vpack.c.bf16 %v1087_v35, %v1085_v31  ;;  %v1028_v40 = vsel %vm1027_vm14, %v1025_v25, %v1022_v9  ;;  %v1175_v22 = vunpack.c.0.s8 %v1174_v28 }
 0x18c   : > { %v1068_v8 = vadd.f32 %v1028_v40, %v812_v29  ;;  %v1046_v0 = vsel %vm1045_vm15, %v1043_v59, %v1040_v36 }
 0x18d   : > { %1474 = vmatprep.subr.bf16.mxu1 %v1473_v53  ;;  %v1070_v30 = vadd.f32 %v1046_v0, %v814_v34  ;;  %v1178_v26 = vsub.s32 %v1175_v22, %v1177_v38 }
 0x18e   : > { %v1084_v50 = vsel %vm828_vm0, %v2126_v44, %v1068_v8 }
 0x18f   : > { %v1086_v12 = vsel %vm830_vm1, %v2138_v3, %v1070_v30 }
 0x190   : > { %v1475_v45 = vpack.c.bf16 %v1086_v12, %v1084_v50 }
 0x192   : > { %1476 = vmatpush1.bf16.msra.mxu1 %v1475_v45 }
 0x195   : > { %1354 = vmatmul.mubr.msk.f32.vlgmr.msra.gmra.mrb[0].mxu1 %vm1095_vm2, %v1088_v49 }
 0x268   : > { %v1165_v39 = vpop.f32.mrb[0].mxu1 }
 0x269   : > { %v1166_v44 = vadd.f32 %v1165_v39, %v1093_v43  ;;  %v1167_v42 = vpop.f32.mrb[1].mxu1 }
 0x26a   : > { %v1168_v3 = vadd.f32 %v1167_v42, %v1093_v43 }
 0x26b   : > { %v1355_v20 = vmul.f32 -1.442695, %v1166_v44 }
 0x26c   : > { %v1172_v56 = vcombine.low %v1166_v44, %v1168_v3  ;;  %v1356_v46 = vmul.f32 -1.442695, %v1168_v3 }
 0x26d   : > { %1602 = vpow2.f32 %v1355_v20 }
 0x26e   : > { %v1179_v17 = vrot.slane %v1172_v56, %v1178_v26  ;;  %1604 = vpow2.f32 %v1356_v46 }
 0x270   : > { %v1186_v52 = vrot.slane %v1179_v17, %v1178_v26 }
 0x272   : > { %1192 = vst.msk [vmem:[%s242_s27] ss:$4 sm:$0x3] %vm1190_vm3, %v1186_v52 }
 0x277   : > { %v1603_v47 = vpop.eup %1602 }
 0x278   : > { %v1605_v58 = vpop.eup %1604  ;;  %v1199_v60 = vadd.f32 1.0, %v1603_v47 }
 0x279   : > { %v1200_v61 = vadd.f32 1.0, %v1605_v58 }
 0x27a   : > { %1606 = vrcp.f32 %v1199_v60 }
 0x27b   : > { %1608 = vrcp.f32 %v1200_v61 }
 0x284   : > { %v1607_v23 = vpop.eup %1606 }
 0x285   : > { %v1609_v37 = vpop.eup %1608  ;;  %v1205_v6 = vmul.f32 1.002, %v1607_v23 }
 0x286   : > { %v1206_v62 = vmul.f32 1.002, %v1609_v37 }
 0x287   : > { %v1357_v1 = vadd.f32 -0.001, %v1205_v6 }
 0x288   : > { %v1358_v55 = vadd.f32 -0.001, %v1206_v62 }
 0x28a   : > { %v1211_v4 = vcombine.low %v1357_v1, %v1358_v55 }
 0x28c   : > { %1213 = vst [vmem:[%s242_s27] sm:$0xee] %v1211_v4 }
 0x28d   : > { %1623 = shalt.err (!%p1620_p5)
}
 0x28e   : > { %s1624_s15 = scalar_lea.hbm %s2409_s10, 128  ;;  %s1628_s24 = scalar_lea.hbm %s2463_s5, 256 }
 0x28f   : > { %p1625_p6 = scmp.ne.s32.totalorder %s2409_s10, %s1624_s15  ;;  %p1629_p10 = scmp.lt.u32.totalorder %s2409_s10, %s2463_s5 }
 0x290   : > { %p1630_p11 = scmp.lt.u32.totalorder %s1628_s24, %s1624_s15  ;;  %p1632_p13 = scmp.lt.u32.totalorder %s1624_s15, %s2409_s10 }
 0x291   : > { %p1626_p7 = pnand %p1625_p6, %p1764_p4 }
 0x292   : > { %p1631_p12 = por %p1630_p11, %p1629_p10 }
 0x293   : > { %p1627_p9 = pneg %p1626_p7 }
 0x294   : > { %p1633_p0 = por %p1632_p13, %p1631_p12 }
 0x296   : > { %p1634_p1 = pnand %p1633_p0, %p1627_p9 }
 0x298   : > { %1637 = shalt.err (!%p1634_p1)
}
 0x299   : > { %1478 = dma.vmem_to_hbm [thread:$0]  (%p1764_p4), %s2411_s7, 128, %s2409_s10, %s1215_s11  }
 0x29a PF: > { %p1484_p2 = scmp.ge.s32.totalorder %s1688_s23, 2  ;;  %s1243_s29 = sand.u32 1, %s1668_s18  }
 0x29b   : > { %s1244_s8 = scalar_lea.sflag [#allocation3], %s1243_s29 }
 0x29c   : > { %p1481_p3 = pnand %p1484_p2, %p1771_p8 }
 0x29e   : > { %1663 = dma.done.wait (!%p1481_p3), %s1244_s8, 128  }
 0x29f   : > { %1665 = vsyncadd (!%p1481_p3), %s1244_s8, 4294967168  ;;  %s18_s23 = sadd.s32 1, %s1688_s23   ;;  %s2490_s18 = smov %s1672_s19 }
 0x2a0   : > { %p15_p5 = scmp.ge.s32.totalorder %s18_s23, 4   ;;  %s2491_s19 = smov %s1676_s20 }
 0x2a1   : > { %s2492_s20 = smov %s1777_s6  ;;  %s2493_s21 = smov %s1684_s22 }
 0x2a2   : > { %s2494_s22 = smov %s2496_s26  ;;  %17 = sbr.rel (!%p15_p5) target bundleno = 4 (0x4), region = 75 }
 0x2a9   :  { %1249 = vsyncpa [#allocation3], 1 }
 0x2aa   :  { %1251 = vsyncpa [#allocation3 + $0x1], 1 }

</bundles_post_ra>
